<compile_context>
chip_gen: v6e
topology: v6e:2x2x1
jax: 0.10.0
libtpu: 0.0.40
codegen_flags: <defaults>
</compile_context>

<pallas_src>
import jax
import jax.numpy as jnp
from jax.experimental import pallas as pl
from jax.experimental.pallas import tpu as pltpu

_LANES = 128
_DEFAULT_TILE_ROWS = 2048   # (2048, 128) f32 = 1 MiB per buffer
_MIN_PALLAS_ROWS = 512      # < 64K elements -> plain XLA (launch overhead dominates)


def _linear_kernel(w_ref, b_ref, x_ref, o_ref):
    # w_ref, b_ref: (1,) float32 scalars in SMEM.
    # x_ref / o_ref: (t_rows, 128) VMEM tiles.  Pure VPU FMA; HBM-bandwidth bound.
    w = w_ref[0]
    b = b_ref[0]
    o_ref[...] = (x_ref[...].astype(jnp.float32) * w + b).astype(o_ref.dtype)


def _pick_tile_rows(rows, tile_rows):
    """Tile rows: multiple of 8 (or == rows), and >=2 grid steps when possible."""
    if rows <= 8:
        return rows                       # block == full sublane extent (always legal)
    t = min(tile_rows, rows)
    if rows >= 16:
        t = min(t, rows // 2)             # guarantee >=2 grid steps (v7x: 2 TCs)
    return max(8, (t // 8) * 8)


def _pallas_fma(x2d, w, b, *, tile_rows):
    rows, lanes = x2d.shape
    t_rows = _pick_tile_rows(rows, tile_rows)
    assert t_rows == rows or t_rows % 8 == 0, "tile rows must be a multiple of 8"
    grid = (pl.cdiv(rows, t_rows),)

    itemsize = jnp.dtype(x2d.dtype).itemsize
    cost = pl.CostEstimate(
        flops=2 * rows * lanes,
        transcendentals=0,
        bytes_accessed=2 * rows * lanes * itemsize + 8,
    )

    return pl.pallas_call(
        _linear_kernel,
        out_shape=jax.ShapeDtypeStruct((rows, lanes), x2d.dtype),
        grid_spec=pltpu.PrefetchScalarGridSpec(
            num_scalar_prefetch=0,
            grid=grid,
            in_specs=[
                pl.BlockSpec(memory_space=pltpu.MemorySpace.SMEM),   # weight (f32 scalar)
                pl.BlockSpec(memory_space=pltpu.MemorySpace.SMEM),   # bias   (f32 scalar)
                pl.BlockSpec((t_rows, lanes), lambda i: (i, 0)),     # streamed input tile
            ],
            out_specs=pl.BlockSpec((t_rows, lanes), lambda i: (i, 0)),
        ),
        compiler_params=pltpu.CompilerParams(
            # Embarrassingly parallel over rows: shards across v7x's 2 TensorCores,
            # harmless on single-TC v5e/v6e.
            dimension_semantics=("parallel",),
        ),
        cost_estimate=cost,
    )(w.reshape(1), b.reshape(1), x2d)


def linear_forward(x, weight, bias, *, tile_rows=_DEFAULT_TILE_ROWS,
                   min_pallas_rows=_MIN_PALLAS_ROWS):
    """PyTorch-equivalent forward of nn.Linear(1, 1).

    x: (N, 1), weight: (1, 1), bias: (1,)  ->  (N, 1)
    """
    n = x.shape[0]
    out_dtype = x.dtype

    # Keep parameters as float32 scalars (safe even if x is bf16); cast at the end.
    w = weight.reshape(()).astype(jnp.float32)
    b = bias.reshape(()).astype(jnp.float32)

    n_main = (n // _LANES) * _LANES      # lane-aligned prefix handled by Pallas
    rows = n_main // _LANES

    # Small-N escape hatch: XLA fuses the scalar FMA into a single mem-bound loop.
    if rows < min_pallas_rows:
        return (x.astype(jnp.float32) * w + b).astype(out_dtype)

    if n_main == n:
        # Fast path: (N, 1) -> (rows, 128) is a zero-copy, bitcast-compatible reshape.
        x2d = x.reshape(rows, _LANES)
        out2d = _pallas_fma(x2d, w, b, tile_rows=tile_rows)
        return out2d.reshape(n, 1)

    # Ragged N: Pallas handles the aligned prefix; a tiny (<128-element) tail is
    # computed in plain XLA and stitched back on.
    x2d = jax.lax.slice(x, (0, 0), (n_main, 1)).reshape(rows, _LANES)
    out_main = _pallas_fma(x2d, w, b, tile_rows=tile_rows).reshape(n_main, 1)
    tail = jax.lax.slice(x, (n_main, 0), (n, 1))
    out_tail = (tail.astype(jnp.float32) * w + b).astype(out_dtype)
    return jnp.concatenate([out_main, out_tail], axis=0)


if __name__ == "__main__":
    key = jax.random.PRNGKey(0)
    kx, kw, kb, kx2, kx3 = jax.random.split(key, 5)

    # nn.Linear(1, 1) parameters (uniform(-1, 1), matching PyTorch's fan_in=1 bound).
    weight = jax.random.uniform(kw, (1, 1), dtype=jnp.float32, minval=-1.0, maxval=1.0)
    bias = jax.random.uniform(kb, (1,), dtype=jnp.float32, minval=-1.0, maxval=1.0)

    # 1) Tiny batch consistent with the module -> small-N XLA escape hatch.
    N = 8
    x = jax.random.normal(kx, (N, 1), dtype=jnp.float32)
    out = jax.block_until_ready(linear_forward(x, weight, bias))
    ref = x @ weight.T + bias
    assert out.shape == (N, 1)
    assert jnp.allclose(out, ref, atol=1e-6), "mismatch vs reference (N=8)"

    # 2) Lane-aligned case -> zero-copy Pallas fast path, multi-step grid.
    N2 = 4096
    x2 = jax.random.normal(kx2, (N2, 1), dtype=jnp.float32)
    out2 = jax.block_until_ready(
        linear_forward(x2, weight, bias, min_pallas_rows=1))
    ref2 = x2 @ weight.T + bias
    assert out2.shape == (N2, 1)
    assert jnp.allclose(out2, ref2, atol=1e-6), "mismatch vs reference (N=4096)"

    # 3) Ragged case -> Pallas on the aligned prefix (ragged last grid block) + XLA tail.
    N3 = 3000
    x3 = jax.random.normal(kx3, (N3, 1), dtype=jnp.float32)
    out3 = jax.block_until_ready(
        linear_forward(x3, weight, bias, min_pallas_rows=1))
    ref3 = x3 @ weight.T + bias
    assert out3.shape == (N3, 1)
    assert jnp.allclose(out3, ref3, atol=1e-6), "mismatch vs reference (N=3000)"

    print("KERNEL_OK")
</pallas_src>

<mosaic_0001>
module attributes {stable_mosaic.version = 11 : i64} {
  func.func @_linear_kernel(%arg0: i32, %arg1: memref<1xf32, #tpu.memory_space<smem>>, %arg2: memref<1xf32, #tpu.memory_space<smem>>, %arg3: memref<16x128xf32, #tpu.memory_space<vmem>>, %arg4: memref<16x128xf32, #tpu.memory_space<vmem>>) attributes {dimension_semantics = [#tpu.dimension_semantics<parallel>], iteration_bounds = array<i64: 2>, scalar_prefetch = 0 : i64, scratch_operands = 0 : i64, tpu.core_type = #tpu.core_type<tc>, window_params = [{transform_indices = @transform_0, window_bounds = array<i64: 1>}, {transform_indices = @transform_1, window_bounds = array<i64: 1>}, {transform_indices = @transform_2, window_bounds = array<i64: 16, 128>}, {transform_indices = @transform_3, window_bounds = array<i64: 16, 128>}]} {
    %c0 = arith.constant 0 : index
    %0 = memref.load %arg1[%c0] : memref<1xf32, #tpu.memory_space<smem>>
    %c0_0 = arith.constant 0 : index
    %1 = memref.load %arg2[%c0_0] : memref<1xf32, #tpu.memory_space<smem>>
    %c0_1 = arith.constant 0 : index
    %c0_2 = arith.constant 0 : index
    %2 = vector.load %arg3[%c0_1, %c0_2] : memref<16x128xf32, #tpu.memory_space<vmem>>, vector<16x128xf32>
    %3 = vector.broadcast %0 : f32 to vector<16x128xf32>
    %4 = arith.mulf %2, %3 : vector<16x128xf32>
    %5 = vector.broadcast %1 : f32 to vector<16x128xf32>
    %6 = arith.addf %4, %5 : vector<16x128xf32>
    %c0_3 = arith.constant 0 : index
    %c0_4 = arith.constant 0 : index
    %7 = vector.load %arg4[%c0_3, %c0_4] : memref<16x128xf32, #tpu.memory_space<vmem>>, vector<16x128xf32>
    tpu.vector_store %arg4[%c0_3, %c0_4], %6 {strides = array<i32>} : memref<16x128xf32, #tpu.memory_space<vmem>>, vector<16x128xf32>,
    return
  }
  func.func @transform_0(%arg0: i32) -> i32 {
    %c0_i32 = arith.constant 0 : i32
    %c0_i32_0 = arith.constant 0 : i32
    return %c0_i32 : i32
  }
  func.func @transform_1(%arg0: i32) -> i32 {
    %c0_i32 = arith.constant 0 : i32
    %c0_i32_0 = arith.constant 0 : i32
    return %c0_i32 : i32
  }
  func.func @transform_2(%arg0: i32) -> (i32, i32) {
    %c0_i32 = arith.constant 0 : i32
    %c0_i32_0 = arith.constant 0 : i32
    return %arg0, %c0_i32 : i32, i32
  }
  func.func @transform_3(%arg0: i32) -> (i32, i32) {
    %c0_i32 = arith.constant 0 : i32
    %c0_i32_0 = arith.constant 0 : i32
    return %arg0, %c0_i32 : i32, i32
  }
}

</mosaic_0001>

<bundles_post_ra>
// kernel: tpu_custom_call.1
= control target key start
LH: loop header
LB: loop body
LE: loop exit
PB: predicated region body
PF: predicated region fallthrough
CT: control target
= control target key end

     0   :  { %s638_s0 = inlined_call_operand.<no memory space> [shape: f32[1], index: 0, kind: input, shape index: {}]   ;;  %s639_s1 = inlined_call_operand.<no memory space> [shape: f32[1], index: 1, kind: input, shape index: {}]   ;;  %s640_s2 = inlined_call_operand.hbm [shape: f32[32,128], index: 2, kind: input, shape index: {}]   ;;  %s641_s3 = inlined_call_operand.hbm [shape: f32[32,128], index: 3, kind: output, shape index: {}]  }
   0x1   :  { %8 = sst [smem:[#allocation2]] %s638_s0 }
   0x2   :  { %9 = sst [smem:[#allocation3]] %s639_s1 }
   0x3   :  { %10 = vsyncpa [#allocation5], 0 }
   0x4   :  { %12 = vsyncpa [#allocation5 + $0x1], 0 }
   0x5   :  { %13 = vsyncpa [#allocation6], 0 }
   0x6   :  { %15 = vsyncpa [#allocation6 + $0x1], 0  ;;  %s484_s16 = smov 0   ;;  %s486_s17 = smov 0  }
   0x7   :  { %s488_s18 = smov 0   ;;  %s490_s19 = smov 0  }
   0x8 LB: > { %s505_s0 = sadd.s32 4294967295, %s450_s19   ;;  %s292_s1 = sadd.s32 4294967294, %s450_s19   ;;  %s450_s19 = sphi %s490_s19, %s656_s19   ;;  %s446_s18 = sphi %s488_s18, %s655_s18   ;;  %s442_s17 = sphi %s486_s17, %s654_s17   ;;  %s438_s16 = sphi %s484_s16, %s653_s16  }
   0x9   : > { %s509_s20 = sadd.s32 1, %s450_s19   ;;  %s70_s21 = sadd.s32 1, %s446_s18 }
   0xa   : > { %s67_s22 = ssub.s32 %s450_s19, %s509_s20  ;;  %p77_p0 = scmp.ne.s32.totalorder %s446_s18, %s442_s17 }
   0xb   : > { %p68_p1 = scmp.eq.s32.totalorder %s67_s22, 0  ;;  %p78_p2 = scmp.eq.s32.totalorder %s450_s19, 0 }
   0xc   : > { %p83_p3 = scmp.ne.s32.totalorder %s442_s17, %s438_s16  ;;  %p84_p4 = scmp.eq.s32.totalorder %s505_s0, 0 }
   0xd   : > { %s521_s23 = scalar_select %p68_p1, %s446_s18, %s70_s21  }
   0xe   : > { %p523_p5 = por %p78_p2, %p77_p0  ;;  %p527_p6 = por %p84_p4, %p83_p3 }
   0xf   : > { %p107_p7 = scmp.eq.s32.totalorder %s505_s0, 1  ;;  %p113_p8 = scmp.eq.s32.totalorder %s292_s1, 1 }
  0x10   : > { %s645_s25 = scalar_select %p527_p6, 1, 0 }
  0x11   : > { %p320_p10 = scmp.lt.s32.totalorder %s450_s19, 2  ;;  %p534_p11 = por %p107_p7, %p77_p0 }
  0x12   : > { %p538_p12 = por %p113_p8, %p83_p3  ;;  %s139_s28 = sand.u32 1, %s446_s18  }
  0x13   : > { %s646_s26 = scalar_select %p534_p11, 1, 0 }
  0x14   : > { %s647_s27 = scalar_select %p538_p12, 1, 0 }
  0x15   : > { %s306_s29 = sshll.u32 %s450_s19, 8  ;;  %s295_s30 = sshll.u32 %s139_s28, 4 }
  0x16   : > { %s547_s6 = scalar_lea.hbm %s640_s2, %s306_s29  ;;  %s143_s7 = scalar_lea.vmem [#allocation4], %s295_s30 }
  0x17   : > { %s150_s8 = sshll.u32 %s143_s7, 4  ;;  %p551_p13 = pnand %p320_p10, %p523_p5  ;;  %s555_s8 = int_to_ptr.vmem [resolvable:$true] %s150_s8 }
  0x18   : > { %s557_s10 = scalar_lea.sflag [#allocation5], %s139_s28  ;;  %s358_s11 = scalar_lea.hbm %s547_s6, 256 }
  0x19   : > { %p359_p0 = scmp.ne.s32.totalorder %s547_s6, %s358_s11  ;;  %p360_p1 = pneg %p551_p13 }
  0x1a   : > { %s363_s14 = scalar_lea.hbm %s640_s2, 512  ;;  %p364_p4 = scmp.lt.s32.totalorder %s547_s6, %s640_s2 }
  0x1b   : > { %p361_p2 = pnand %p360_p1, %p359_p0  ;;  %p365_p5 = scmp.lt.s32.totalorder %s363_s14, %s358_s11 }
  0x1d   : > { %p362_p3 = pneg %p361_p2  ;;  %p366_p7 = por %p365_p5, %p364_p4 }
  0x1f   : > { %p367_p8 = pnand %p366_p7, %p362_p3 }
  0x21   : > { %370 = shalt.err (!%p367_p8)
}
  0x22   : > { %s371_s21 = scalar_lea.vmem %s555_s8, 256  ;;  %s452_s22 = smov [#allocation4]  }
  0x23   : > { %p372_p10 = scmp.ne.s32.totalorder %s555_s8, %s371_s21  ;;  %s376_s24 = sshll.u32 %s452_s22, 4  ;;  %s377_s24 = int_to_ptr.vmem [resolvable:$false] %s376_s24 }
  0x24   : > { %s378_s28 = scalar_lea.vmem %s377_s24, 512  ;;  %p379_p2 = scmp.lt.s32.totalorder %s555_s8, %s377_s24 }
  0x25   : > { %p374_p9 = pnand %p372_p10, %p360_p1  ;;  %p380_p12 = scmp.lt.s32.totalorder %s378_s28, %s371_s21 }
  0x27   : > { %p375_p0 = pneg %p374_p9  ;;  %p381_p11 = por %p380_p12, %p379_p2 }
  0x29   : > { %p382_p6 = pnand %p381_p11, %p375_p0 }
  0x2b   : > { %385 = shalt.err (!%p382_p6)
}
  0x2c   : > { %s453_s29 = smov 128   ;;  %s454_s30 = smov 8  }
  0x2d   : > { %315 = dma.hbm_to_vmem [thread:$0]  (!%p551_p13), %s547_s6, 256, %s555_s8, %s557_s10, %s453_s29, %s453_s29, %s454_s30  }
  0x2e   : > { %p298_p9 = scmp.ge.s32.totalorder %s450_s19, 1  ;;  %p158_p1 = scmp.lt.s32.totalorder %s450_s19, 3 }
  0x30   : > { %p159_p3 = pnand %p298_p9, %p158_p1 }
  0x31   : > { %s581_s4 = sand.u32 (!%p159_p3), 1, %s442_s17   ;;  %p649_p6 = scmp.ne.s32.totalorder (!%p159_p3), %s645_s25, 0 }
  0x32   : > { %162 = sbr.rel (%p159_p3) target bundleno = 83 (0x53), region = 32  ;;  %s299_s5 = sshll.u32 (!%p159_p3), %s581_s4, 4 }
  0x33   : > { %s165_s7 = scalar_lea.sflag (!%p159_p3), [#allocation5], %s581_s4  ;;  %s168_s11 = scalar_lea.vmem (!%p159_p3), [#allocation4], %s299_s5 }
  0x37   : > { %429 = dma.done.wait (%p649_p6), %s165_s7, 256  }
  0x38   : > { %431 = vsyncadd (%p649_p6), %s165_s7, 4294967040  ;;  %s193_s6 = sld [smem:[#allocation2]]  ;;  %s190_s9 = scalar_lea.vmem [#allocation7], %s299_s5  ;;  %v195_v0 = vld [vmem:[%s168_s11] sm:$0xff]  ;;  %v196_v2 = vld [vmem:[%s168_s11 + $0x8] sm:$0xff] }
  0x39   : > { %s194_s8 = sld [smem:[#allocation3]]  ;;  %s219_s10 = sshll.u32 %s190_s9, 4  ;;  %s590_s10 = int_to_ptr.vmem [resolvable:$true] %s219_s10 }
  0x3a   : > { %s307_s12 = sshll.u32 %s505_s0, 8  ;;  %s206_s15 = scalar_lea.sflag [#allocation6], %s581_s4 }
  0x3b   : > { %s595_s14 = scalar_lea.hbm %s641_s3, %s307_s12  ;;  %s386_s1 = scalar_lea.vmem %s590_s10, 256 }
  0x3c   : > { %p387_p11 = scmp.ne.s32.totalorder %s590_s10, %s386_s1  ;;  %p650_p12 = scmp.ne.s32.totalorder %s646_s26, 0 }
  0x3d   : > { %s455_s0 = smov [#allocation7]  }
  0x3e   : > { %v197_v1 = vstv %s193_s6  ;;  %p388_p13 = pnand %p387_p11, %p650_p12  ;;  %s390_s21 = sshll.u32 %s455_s0, 4  ;;  %s391_s21 = int_to_ptr.vmem [resolvable:$false] %s390_s21 }
  0x3f   : > { %v198_v3 = vmul.f32 %v197_v1, %v195_v0  ;;  %v200_v4 = vstv %s194_s8  ;;  %v199_v5 = vmul.f32 %v197_v1, %v196_v2  ;;  %s392_s22 = scalar_lea.vmem %s391_s21, 512  ;;  %p393_p5 = scmp.lt.s32.totalorder %s590_s10, %s391_s21 }
  0x40   : > { %p389_p4 = pneg %p388_p13  ;;  %p394_p7 = scmp.lt.s32.totalorder %s392_s22, %s386_s1 }
  0x41   : > { %v201_v6 = vadd.f32 %v200_v4, %v198_v3  ;;  %v202_v7 = vadd.f32 %v200_v4, %v199_v5 }
  0x42   : > { %p395_p8 = por %p394_p7, %p393_p5 }
  0x43   : > { %203 = vst [vmem:[%s190_s9] sm:$0xff] %v201_v6  ;;  %204 = vst [vmem:[%s190_s9 + $0x8] sm:$0xff] %v202_v7 }
  0x44   : > { %p396_p10 = pnand %p395_p8, %p389_p4 }
  0x46   : > { %399 = shalt.err (!%p396_p10)
}
  0x47   : > { %s400_s24 = scalar_lea.hbm %s595_s14, 256  ;;  %s404_s30 = scalar_lea.hbm %s641_s3, 512 }
  0x48   : > { %p401_p0 = scmp.ne.s32.totalorder %s595_s14, %s400_s24  ;;  %p405_p1 = scmp.lt.s32.totalorder %s595_s14, %s641_s3 }
  0x49   : > { %p406_p3 = scmp.lt.s32.totalorder %s404_s30, %s400_s24 }
  0x4a   : > { %p402_p2 = pnand %p401_p0, %p650_p12 }
  0x4b   : > { %p407_p6 = por %p406_p3, %p405_p1 }
  0x4c   : > { %p403_p9 = pneg %p402_p2 }
  0x4e   : > { %p408_p11 = pnand %p407_p6, %p403_p9 }
  0x50   : > { %411 = shalt.err (!%p408_p11)
}
  0x51   : > { %s456_s11 = smov 128   ;;  %s457_s6 = smov 8  }
  0x52   : > { %310 = dma.vmem_to_hbm [thread:$0]  (%p650_p12), %s590_s10, 256, %s595_s14, %s206_s15, %s456_s11, %s456_s11, %s457_s6  }
  0x53 PF: > { %s234_s8 = sand.u32 1, %s438_s16   ;;  %p651_p13 = scmp.ne.s32.totalorder %s647_s27, 0 }
  0x54   : > { %p652_p4 = scmp.ge.s32.totalorder %s450_s19, 2  ;;  %s235_s9 = scalar_lea.sflag [#allocation6], %s234_s8 }
  0x56   : > { %p317_p5 = pnand %p652_p4, %p651_p13 }
  0x58   : > { %p318_p7 = pneg %p317_p5 }
  0x5a   : > { %433 = dma.done.wait (%p318_p7), %s235_s9, 256  }
  0x5b   : > { %435 = vsyncadd (%p318_p7), %s235_s9, 4294967040  ;;  %p18_p8 = scmp.ge.s32.totalorder %s509_s20, 4   ;;  %s653_s16 = smov %s442_s17 }
  0x5c   : > { %s654_s17 = smov %s446_s18  ;;  %s655_s18 = smov %s521_s23 }
  0x5d   : > { %s656_s19 = smov %s509_s20  ;;  %20 = sbr.rel (!%p18_p8) target bundleno = 8 (0x8), region = 77 }
  0x62   :  { %240 = vsyncpa [#allocation5], 1 }
  0x63   :  { %242 = vsyncpa [#allocation5 + $0x1], 1 }
  0x64   :  { %243 = vsyncpa [#allocation6], 1 }
  0x65   :  { %245 = vsyncpa [#allocation6 + $0x1], 1 }

</bundles_post_ra>
